<compile_context>
chip_gen: v7x
topology: tpu7x:2x2x1
jax: 0.10.0
libtpu: 0.0.40
codegen_flags: <defaults>
</compile_context>

<pallas_src>
import functools

import jax
import jax.numpy as jnp
from jax.experimental import pallas as pl
from jax.experimental.pallas import tpu as pltpu


def _focal_loss_kernel(logits_ref, label_ref, alpha_ref, out_ref, *,
                       gamma, smooth_eps, num_classes, sub, pix_valid,
                       need_mask):
    c = num_classes
    lab = label_ref[0, :, :]                                   # (sub, 128) i32

    # ---- pass 1: per-pixel max over classes (C-1 elementwise maxes, VPU) ----
    m = logits_ref[0, 0, :, :].astype(jnp.float32)
    for ci in range(1, c):
        m = jnp.maximum(m, logits_ref[0, ci, :, :].astype(jnp.float32))

    # ---- pass 2: exp-sum + label gather via compare/select (unrolled) ----
    denom = jnp.zeros_like(m)       # sum_c exp(x_c - m)
    sum_shift = jnp.zeros_like(m)   # sum_c (x_c - m)   (for the smoothing CE)
    shift_lab = jnp.zeros_like(m)   # x_label - m
    alpha_t = jnp.zeros_like(m)     # alpha[label]
    for ci in range(c):
        s = logits_ref[0, ci, :, :].astype(jnp.float32) - m
        denom = denom + jnp.exp(s)
        sum_shift = sum_shift + s
        sel = lab == ci
        shift_lab = jnp.where(sel, s, shift_lab)
        alpha_t = jnp.where(sel, alpha_ref[ci], alpha_t)       # scalar from SMEM

    log_denom = jnp.log(denom)
    log_pt = shift_lab - log_denom                             # log softmax @ label
    pt = jnp.exp(log_pt)                                       # no pred / no divide

    one_minus = 1.0 - pt
    if gamma == 2:
        diff = one_minus * one_minus                           # pure VALU
    else:
        diff = one_minus ** gamma                              # gamma is a Python int
    fl = -alpha_t * diff * log_pt

    # lce = -sum_c log_softmax_c / C = (C*log_denom - sum_shift) / C
    lce = (log_denom * float(c) - sum_shift) * (1.0 / float(c))
    loss = (1.0 - smooth_eps) * fl + smooth_eps * lce

    if need_mask:
        # mask pixels past the real image (pad rows / OOB last chunk)
        j = pl.program_id(1)
        row = jax.lax.broadcasted_iota(jnp.int32, (sub, 128), 0)
        lane = jax.lax.broadcasted_iota(jnp.int32, (sub, 128), 1)
        pix = (j * sub + row) * 128 + lane
        loss = jnp.where(pix < pix_valid, loss, 0.0)

    # fold sublane rows into a lane-dense per-chunk partial (VPU adds only)
    if sub > 8:                                  # sub is a multiple of 8 here
        partial = loss.reshape(sub // 8, 8, 128).sum(axis=0)
    else:
        partial = loss
    out_ref[0, 0, :, :] = partial


def label_smooth_focal_loss(logits, label, alpha, *, gamma=2,
                            smooth_eps=0.01, average=True):
    """logits: (b, c, h, w) float32/bfloat16, label: (b, h, w) int, alpha: (c,)."""
    b, c, h, w = logits.shape
    p = h * w
    n = b * p

    alpha = jnp.broadcast_to(jnp.asarray(alpha, jnp.float32).reshape(-1), (c,))

    # Free reshapes only -- no NCHW->NHWC transpose / extra HBM pass.
    p_pad = ((p + 127) // 128) * 128
    logits3 = logits.reshape(b, c, p)
    label2 = label.reshape(b, p).astype(jnp.int32)
    if p_pad != p:
        # TODO(synk): this pad is one extra HBM pass; only taken when h*w % 128 != 0.
        logits3 = jnp.pad(logits3, ((0, 0), (0, 0), (0, p_pad - p)))
        label2 = jnp.pad(label2, ((0, 0), (0, p_pad - p)))
    nr = p_pad // 128
    logits4 = logits3.reshape(b, c, nr, 128)
    label3 = label2.reshape(b, nr, 128)

    # Tile size: ~1 MiB of logits per step, sublane-aligned, capped by NR.
    # Double-buffered logits + labels stays far below the 32 MiB scoped VMEM
    # (safe on v5e/v6e/v7x).
    itemsize = jnp.dtype(logits.dtype).itemsize
    if nr <= 8:
        sub = nr
    else:
        target_rows = max(8, ((1 << 20) // (c * 128 * itemsize)) // 8 * 8)
        sub = min(target_rows, (nr // 8) * 8)
    nchunks = (nr + sub - 1) // sub
    sub_out = min(sub, 8)
    need_mask = (p_pad != p) or (nr % sub != 0)

    kernel = functools.partial(
        _focal_loss_kernel, gamma=gamma, smooth_eps=smooth_eps,
        num_classes=c, sub=sub, pix_valid=p, need_mask=need_mask)

    partials = pl.pallas_call(
        kernel,
        out_shape=jax.ShapeDtypeStruct((b, nchunks, sub_out, 128), jnp.float32),
        grid=(b, nchunks),
        in_specs=[
            pl.BlockSpec((1, c, sub, 128), lambda i, j: (i, 0, j, 0)),
            pl.BlockSpec((1, sub, 128), lambda i, j: (i, j, 0)),
            pl.BlockSpec(memory_space=pltpu.MemorySpace.SMEM),
        ],
        out_specs=pl.BlockSpec((1, 1, sub_out, 128), lambda i, j: (i, j, 0, 0)),
        compiler_params=pltpu.CompilerParams(
            dimension_semantics=("parallel", "parallel"),
            vmem_limit_bytes=32 * 1024 * 1024),
    )(logits4, label3, alpha)

    total = jnp.sum(partials)
    return total / float(n) if average else total


def _reference(logits, label, alpha, *, gamma=2, smooth_eps=0.01, average=True):
    b, c, h, w = logits.shape
    pred = jax.nn.softmax(logits, axis=1)
    pred = jnp.transpose(pred, (0, 2, 3, 1)).reshape(-1, c)
    lab = label.reshape(-1)
    alpha_t = alpha[lab]
    pt = pred[jnp.arange(pred.shape[0]), lab]
    fl = -alpha_t * (1.0 - pt) ** gamma * jnp.log(pt)
    lce = -jnp.sum(jnp.log(pred), axis=1) / c
    loss = (1.0 - smooth_eps) * fl + smooth_eps * lce
    return jnp.mean(loss) if average else jnp.sum(loss)


if __name__ == "__main__":
    key = jax.random.PRNGKey(0)
    k1, k2 = jax.random.split(key)

    b, c, h, w = 2, 4, 16, 16
    logits = jax.random.normal(k1, (b, c, h, w), dtype=jnp.float32)
    label = jax.random.randint(k2, (b, h, w), 0, c, dtype=jnp.int32)
    # deterministic per-class alpha (module's __init__ with alpha as a list)
    alpha = jnp.array([0.25, 0.5, 0.75, 1.0], dtype=jnp.float32)

    loss = label_smooth_focal_loss(logits, label, alpha,
                                   gamma=2, smooth_eps=0.01, average=True)
    loss = jax.block_until_ready(loss)

    ref = _reference(logits, label, alpha, gamma=2, smooth_eps=0.01, average=True)
    assert jnp.allclose(loss, ref, rtol=1e-5, atol=1e-5), (loss, ref)

    print("KERNEL_OK")
</pallas_src>

<mosaic_0001>
module attributes {stable_mosaic.version = 11 : i64} {
  func.func @_focal_loss_kernel(%arg0: i32, %arg1: i32, %arg2: memref<1x4x2x128xf32, #tpu.memory_space<vmem>>, %arg3: memref<1x2x128xi32, #tpu.memory_space<vmem>>, %arg4: memref<4xf32, #tpu.memory_space<smem>>, %arg5: memref<1x1x2x128xf32, #tpu.memory_space<vmem>>) attributes {dimension_semantics = [#tpu.dimension_semantics<parallel>, #tpu.dimension_semantics<parallel>], iteration_bounds = array<i64: 2, 1>, scalar_prefetch = 0 : i64, scratch_operands = 0 : i64, tpu.core_type = #tpu.core_type<tc>, window_params = [{transform_indices = @transform_0, window_bounds = array<i64: 1, 4, 2, 128>}, {transform_indices = @transform_1, window_bounds = array<i64: 1, 2, 128>}, {transform_indices = @transform_2, window_bounds = array<i64: 4>}, {transform_indices = @transform_3, window_bounds = array<i64: 1, 1, 2, 128>}]} {
    %c0 = arith.constant 0 : index
    %c0_0 = arith.constant 0 : index
    %c0_1 = arith.constant 0 : index
    %0 = vector.load %arg3[%c0, %c0_0, %c0_1] : memref<1x2x128xi32, #tpu.memory_space<vmem>>, vector<1x2x128xi32>
    %1 = vector.shape_cast %0 : vector<1x2x128xi32> to vector<2x128xi32>
    %c0_2 = arith.constant 0 : index
    %c0_3 = arith.constant 0 : index
    %c0_4 = arith.constant 0 : index
    %c0_5 = arith.constant 0 : index
    %2 = vector.load %arg2[%c0_2, %c0_3, %c0_4, %c0_5] : memref<1x4x2x128xf32, #tpu.memory_space<vmem>>, vector<1x1x2x128xf32>
    %3 = vector.shape_cast %2 : vector<1x1x2x128xf32> to vector<2x128xf32>
    %c0_6 = arith.constant 0 : index
    %c1 = arith.constant 1 : index
    %c0_7 = arith.constant 0 : index
    %c0_8 = arith.constant 0 : index
    %4 = vector.load %arg2[%c0_6, %c1, %c0_7, %c0_8] : memref<1x4x2x128xf32, #tpu.memory_space<vmem>>, vector<1x1x2x128xf32>
    %5 = vector.shape_cast %4 : vector<1x1x2x128xf32> to vector<2x128xf32>
    %6 = arith.maximumf %3, %5 : vector<2x128xf32>
    %c0_9 = arith.constant 0 : index
    %c2 = arith.constant 2 : index
    %c0_10 = arith.constant 0 : index
    %c0_11 = arith.constant 0 : index
    %7 = vector.load %arg2[%c0_9, %c2, %c0_10, %c0_11] : memref<1x4x2x128xf32, #tpu.memory_space<vmem>>, vector<1x1x2x128xf32>
    %8 = vector.shape_cast %7 : vector<1x1x2x128xf32> to vector<2x128xf32>
    %9 = arith.maximumf %6, %8 : vector<2x128xf32>
    %c0_12 = arith.constant 0 : index
    %c3 = arith.constant 3 : index
    %c0_13 = arith.constant 0 : index
    %c0_14 = arith.constant 0 : index
    %10 = vector.load %arg2[%c0_12, %c3, %c0_13, %c0_14] : memref<1x4x2x128xf32, #tpu.memory_space<vmem>>, vector<1x1x2x128xf32>
    %11 = vector.shape_cast %10 : vector<1x1x2x128xf32> to vector<2x128xf32>
    %12 = arith.maximumf %9, %11 : vector<2x128xf32>
    %cst = arith.constant 0.000000e+00 : f32
    %13 = vector.broadcast %cst : f32 to vector<2x128xf32>
    %cst_15 = arith.constant 0.000000e+00 : f32
    %14 = vector.broadcast %cst_15 : f32 to vector<2x128xf32>
    %cst_16 = arith.constant 0.000000e+00 : f32
    %15 = vector.broadcast %cst_16 : f32 to vector<2x128xf32>
    %cst_17 = arith.constant 0.000000e+00 : f32
    %16 = vector.broadcast %cst_17 : f32 to vector<2x128xf32>
    %c0_18 = arith.constant 0 : index
    %c0_19 = arith.constant 0 : index
    %c0_20 = arith.constant 0 : index
    %c0_21 = arith.constant 0 : index
    %17 = vector.load %arg2[%c0_18, %c0_19, %c0_20, %c0_21] : memref<1x4x2x128xf32, #tpu.memory_space<vmem>>, vector<1x1x2x128xf32>
    %18 = vector.shape_cast %17 : vector<1x1x2x128xf32> to vector<2x128xf32>
    %19 = arith.subf %18, %12 : vector<2x128xf32>
    %20 = math.exp %19 : vector<2x128xf32>
    %21 = arith.addf %13, %20 : vector<2x128xf32>
    %22 = arith.addf %14, %19 : vector<2x128xf32>
    %c0_i32 = arith.constant 0 : i32
    %23 = vector.broadcast %c0_i32 : i32 to vector<2x128xi32>
    %24 = arith.cmpi eq, %1, %23 : vector<2x128xi32>
    %25 = arith.select %24, %19, %15 : vector<2x128xi1>, vector<2x128xf32>
    %c0_22 = arith.constant 0 : index
    %26 = memref.load %arg4[%c0_22] : memref<4xf32, #tpu.memory_space<smem>>
    %27 = vector.broadcast %26 : f32 to vector<2x128xf32>
    %28 = arith.select %24, %27, %16 : vector<2x128xi1>, vector<2x128xf32>
    %c0_23 = arith.constant 0 : index
    %c1_24 = arith.constant 1 : index
    %c0_25 = arith.constant 0 : index
    %c0_26 = arith.constant 0 : index
    %29 = vector.load %arg2[%c0_23, %c1_24, %c0_25, %c0_26] : memref<1x4x2x128xf32, #tpu.memory_space<vmem>>, vector<1x1x2x128xf32>
    %30 = vector.shape_cast %29 : vector<1x1x2x128xf32> to vector<2x128xf32>
    %31 = arith.subf %30, %12 : vector<2x128xf32>
    %32 = math.exp %31 : vector<2x128xf32>
    %33 = arith.addf %21, %32 : vector<2x128xf32>
    %34 = arith.addf %22, %31 : vector<2x128xf32>
    %c1_i32 = arith.constant 1 : i32
    %35 = vector.broadcast %c1_i32 : i32 to vector<2x128xi32>
    %36 = arith.cmpi eq, %1, %35 : vector<2x128xi32>
    %37 = arith.select %36, %31, %25 : vector<2x128xi1>, vector<2x128xf32>
    %c1_27 = arith.constant 1 : index
    %38 = memref.load %arg4[%c1_27] : memref<4xf32, #tpu.memory_space<smem>>
    %39 = vector.broadcast %38 : f32 to vector<2x128xf32>
    %40 = arith.select %36, %39, %28 : vector<2x128xi1>, vector<2x128xf32>
    %c0_28 = arith.constant 0 : index
    %c2_29 = arith.constant 2 : index
    %c0_30 = arith.constant 0 : index
    %c0_31 = arith.constant 0 : index
    %41 = vector.load %arg2[%c0_28, %c2_29, %c0_30, %c0_31] : memref<1x4x2x128xf32, #tpu.memory_space<vmem>>, vector<1x1x2x128xf32>
    %42 = vector.shape_cast %41 : vector<1x1x2x128xf32> to vector<2x128xf32>
    %43 = arith.subf %42, %12 : vector<2x128xf32>
    %44 = math.exp %43 : vector<2x128xf32>
    %45 = arith.addf %33, %44 : vector<2x128xf32>
    %46 = arith.addf %34, %43 : vector<2x128xf32>
    %c2_i32 = arith.constant 2 : i32
    %47 = vector.broadcast %c2_i32 : i32 to vector<2x128xi32>
    %48 = arith.cmpi eq, %1, %47 : vector<2x128xi32>
    %49 = arith.select %48, %43, %37 : vector<2x128xi1>, vector<2x128xf32>
    %c2_32 = arith.constant 2 : index
    %50 = memref.load %arg4[%c2_32] : memref<4xf32, #tpu.memory_space<smem>>
    %51 = vector.broadcast %50 : f32 to vector<2x128xf32>
    %52 = arith.select %48, %51, %40 : vector<2x128xi1>, vector<2x128xf32>
    %c0_33 = arith.constant 0 : index
    %c3_34 = arith.constant 3 : index
    %c0_35 = arith.constant 0 : index
    %c0_36 = arith.constant 0 : index
    %53 = vector.load %arg2[%c0_33, %c3_34, %c0_35, %c0_36] : memref<1x4x2x128xf32, #tpu.memory_space<vmem>>, vector<1x1x2x128xf32>
    %54 = vector.shape_cast %53 : vector<1x1x2x128xf32> to vector<2x128xf32>
    %55 = arith.subf %54, %12 : vector<2x128xf32>
    %56 = math.exp %55 : vector<2x128xf32>
    %57 = arith.addf %45, %56 : vector<2x128xf32>
    %58 = arith.addf %46, %55 : vector<2x128xf32>
    %c3_i32 = arith.constant 3 : i32
    %59 = vector.broadcast %c3_i32 : i32 to vector<2x128xi32>
    %60 = arith.cmpi eq, %1, %59 : vector<2x128xi32>
    %61 = arith.select %60, %55, %49 : vector<2x128xi1>, vector<2x128xf32>
    %c3_37 = arith.constant 3 : index
    %62 = memref.load %arg4[%c3_37] : memref<4xf32, #tpu.memory_space<smem>>
    %63 = vector.broadcast %62 : f32 to vector<2x128xf32>
    %64 = arith.select %60, %63, %52 : vector<2x128xi1>, vector<2x128xf32>
    %65 = math.log %57 : vector<2x128xf32>
    %66 = arith.subf %61, %65 : vector<2x128xf32>
    %67 = math.exp %66 : vector<2x128xf32>
    %cst_38 = arith.constant 1.000000e+00 : f32
    %68 = vector.broadcast %cst_38 : f32 to vector<2x128xf32>
    %69 = arith.subf %68, %67 : vector<2x128xf32>
    %70 = arith.mulf %69, %69 : vector<2x128xf32>
    %cst_39 = arith.constant 0.000000e+00 : f32
    %71 = vector.broadcast %cst_39 : f32 to vector<2x128xf32>
    %72 = arith.subf %71, %64 : vector<2x128xf32>
    %73 = arith.mulf %72, %70 : vector<2x128xf32>
    %74 = arith.mulf %73, %66 : vector<2x128xf32>
    %cst_40 = arith.constant 4.000000e+00 : f32
    %75 = vector.broadcast %cst_40 : f32 to vector<2x128xf32>
    %76 = arith.mulf %65, %75 : vector<2x128xf32>
    %77 = arith.subf %76, %58 : vector<2x128xf32>
    %cst_41 = arith.constant 2.500000e-01 : f32
    %78 = vector.broadcast %cst_41 : f32 to vector<2x128xf32>
    %79 = arith.mulf %77, %78 : vector<2x128xf32>
    %cst_42 = arith.constant 9.900000e-01 : f32
    %80 = vector.broadcast %cst_42 : f32 to vector<2x128xf32>
    %81 = arith.mulf %80, %74 : vector<2x128xf32>
    %cst_43 = arith.constant 0.00999999977 : f32
    %82 = vector.broadcast %cst_43 : f32 to vector<2x128xf32>
    %83 = arith.mulf %82, %79 : vector<2x128xf32>
    %84 = arith.addf %81, %83 : vector<2x128xf32>
    %c0_44 = arith.constant 0 : index
    %c0_45 = arith.constant 0 : index
    %c0_46 = arith.constant 0 : index
    %c0_47 = arith.constant 0 : index
    %85 = vector.load %arg5[%c0_44, %c0_45, %c0_46, %c0_47] : memref<1x1x2x128xf32, #tpu.memory_space<vmem>>, vector<1x1x2x128xf32>
    %86 = vector.shape_cast %85 : vector<1x1x2x128xf32> to vector<2x128xf32>
    %87 = vector.shape_cast %84 : vector<2x128xf32> to vector<1x1x2x128xf32>
    tpu.vector_store %arg5[%c0_44, %c0_45, %c0_46, %c0_47], %87 {strides = array<i32>} : memref<1x1x2x128xf32, #tpu.memory_space<vmem>>, vector<1x1x2x128xf32>,
    return
  }
  func.func @transform_0(%arg0: i32, %arg1: i32) -> (i32, i32, i32, i32) {
    %c0_i32 = arith.constant 0 : i32
    %c0_i32_0 = arith.constant 0 : i32
    %c0_i32_1 = arith.constant 0 : i32
    return %arg0, %c0_i32, %arg1, %c0_i32_0 : i32, i32, i32, i32
  }
  func.func @transform_1(%arg0: i32, %arg1: i32) -> (i32, i32, i32) {
    %c0_i32 = arith.constant 0 : i32
    %c0_i32_0 = arith.constant 0 : i32
    return %arg0, %arg1, %c0_i32 : i32, i32, i32
  }
  func.func @transform_2(%arg0: i32, %arg1: i32) -> i32 {
    %c0_i32 = arith.constant 0 : i32
    %c0_i32_0 = arith.constant 0 : i32
    return %c0_i32 : i32
  }
  func.func @transform_3(%arg0: i32, %arg1: i32) -> (i32, i32, i32, i32) {
    %c0_i32 = arith.constant 0 : i32
    %c0_i32_0 = arith.constant 0 : i32
    %c0_i32_1 = arith.constant 0 : i32
    return %arg0, %arg1, %c0_i32, %c0_i32_0 : i32, i32, i32, i32
  }
}

</mosaic_0001>

<bundles_post_ra>
// kernel: tpu_custom_call.1
= control target key start
LH: loop header
LB: loop body
LE: loop exit
PB: predicated region body
PF: predicated region fallthrough
CT: control target
= control target key end

     0   :  { %s1029_s0 = inlined_call_operand.hbm [shape: f32[2,4,2,128], index: 0, kind: input, shape index: {}]   ;;  %s1030_s1 = inlined_call_operand.hbm [shape: s32[2,2,128], index: 1, kind: input, shape index: {}]   ;;  %s1031_s2 = inlined_call_operand.vmem [shape: f32[4], index: 2, kind: input, shape index: {}]   ;;  %s1032_s3 = inlined_call_operand.hbm [shape: f32[2,1,2,128], index: 3, kind: output, shape index: {}]  }
   0x1   :  { %1038 = sst [smem:[#allocation14_spill]] %s1029_s0 }
   0x2   :  { %1039 = sst [smem:[#allocation15_spill]] %s1031_s2 }
   0x3   :  { %8 = vsyncpa [#allocation3], 0 }
   0x4   :  { %10 = vsyncpa [#allocation3 + $0x1], 0 }
   0x5   :  { %11 = vsyncpa [#allocation7], 0 }
   0x6   :  { %13 = vsyncpa [#allocation7 + $0x1], 0 }
   0x7   :  { %14 = vsyncpa [#allocation5], 0 }
   0x8   :  { %15 = vsyncpa [#allocation4], 0 }
   0x9   :  { %17 = vsyncpa [#allocation4 + $0x1], 0  ;;  %s771_s12 = smov 0   ;;  %s773_s13 = smov 0  }
   0xa   :  { %s775_s14 = smov 0   ;;  %s777_s15 = smov 0  }
   0xb   :  { %s779_s16 = smov 0   ;;  %s781_s17 = smov 0  }
   0xc LB: > { %s460_s18 = sadd.s32 4294967295, %s743_s17   ;;  %s461_s19 = sadd.s32 4294967294, %s743_s17   ;;  %s743_s17 = sphi %s781_s17, %s23_s17   ;;  %s739_s16 = sphi %s779_s16, %s1061_s16   ;;  %s735_s15 = sphi %s777_s15, %s1060_s15   ;;  %s731_s14 = sphi %s775_s14, %s1059_s14   ;;  %s727_s13 = sphi %s773_s13, %s1058_s13   ;;  %s723_s12 = sphi %s771_s12, %s1057_s12  }
   0xd   : > { %s44_s20 = sadd.s32 1, %s731_s14  ;;  %p51_p0 = scmp.ne.s32.totalorder %s731_s14, %s727_s13 }
   0xe   : > { %p52_p1 = scmp.eq.s32.totalorder %s743_s17, 0  ;;  %p57_p2 = scmp.ne.s32.totalorder %s727_s13, %s723_s12 }
   0xf   : > { %p809_p3 = scmp.eq.s32.totalorder %s460_s18, 0  ;;  %p132_p4 = scmp.eq.s32.totalorder %s460_s18, 1 }
  0x10   : > { %p813_p5 = por %p52_p1, %p51_p0  ;;  %p138_p6 = scmp.eq.s32.totalorder %s461_s19, 1 }
  0x11   : > { %s1040_s21 = scalar_select %p809_p3, 1, 0 }
  0x12   : > { %p819_p7 = por %p809_p3, %p57_p2  ;;  %p823_p8 = por %p132_p4, %p51_p0 }
  0x13   : > { %p827_p9 = por %p138_p6, %p57_p2  ;;  %p462_p10 = scmp.ge.s32.totalorder %s743_s17, 1 }
  0x14   : > { %s1042_s23 = scalar_select %p819_p7, 1, 0 }
  0x15   : > { %s1043_s24 = scalar_select %p823_p8, 1, 0 }
  0x16   : > { %s1044_s25 = scalar_select %p827_p9, 1, 0 }
  0x17   : > { %p145_p11 = scmp.lt.s32.totalorder %s743_s17, 3  ;;  %s1045_s2 = sld [smem:[#allocation15_spill]] }
  0x18   : > { %p512_p0 = scmp.lt.s32.totalorder %s743_s17, 2  ;;  %s35_s5 = sadd.s32 1, %s739_s16 }
  0x19   : > { %p836_p12 = pnand %p462_p10, %p145_p11  ;;  %p857_p6 = scmp.ge.s32.totalorder %s35_s5, 2 }
  0x1a   : > { %p846_p2 = pnand %p512_p0, %p813_p5  ;;  %s862_s7 = sand.u32 1, %s731_s14  }
  0x1b   : > { %s1046_s29 = scalar_select %p836_p12, 1, 0 }
  0x1c   : > { %p496_p1 = pneg %p836_p12 }
  0x1d   : > { %s158_s28 = sshll.u32 %s1045_s2, 4  ;;  %s159_s28 = int_to_ptr.vmem [resolvable:$true] %s158_s28 }
  0x1e   : > { %p852_p4 = pnand %p496_p1, %p809_p3  ;;  %s578_s8 = scalar_lea.vmem %s159_s28, 16 }
  0x1f   : > { %p579_p10 = scmp.ne.s32.totalorder %s159_s28, %s578_s8  ;;  %p586_p13 = scmp.lt.s32.totalorder %s159_s28, %s159_s28 }
  0x20   : > { %p580_p5 = pneg %p852_p4  ;;  %p587_p9 = scmp.lt.s32.totalorder %s578_s8, %s578_s8 }
  0x22   : > { %p581_p11 = pnand %p580_p5, %p579_p10  ;;  %p588_p1 = por %p587_p9, %p586_p13 }
  0x24   : > { %p582_p0 = pneg %p581_p11 }
  0x26   : > { %p589_p8 = pnand %p588_p1, %p582_p0 }
  0x28   : > { %592 = shalt.err (!%p589_p8)
}
  0x29   : > { %s745_s9 = smov [#allocation8]   ;;  %s1063_s5 = smov (%p857_p6, %s35_s5), 0 }
  0x2a   : > { %499 = dma.vmem_to_smem (!%p852_p4), %s159_s28, 16, %s745_s9, [#allocation5]  }
  0x2b   : > { %s465_s10 = sshll.u32 %s862_s7, 3  ;;  %s39_s11 = ssub.s32 %s739_s16, %s1063_s5 }
  0x2c   : > { %p42_p8 = scmp.eq.s32.totalorder %s39_s11, 0  ;;  %s485_s18 = sshll.u32 %s739_s16, 7 }
  0x2d   : > { %s1050_s0 = sld [smem:[#allocation14_spill]]  ;;  %s173_s27 = scalar_lea.vmem [#allocation2], %s465_s10 }
  0x2e   : > { %s181_s4 = sshll.u32 %s173_s27, 4  ;;  %s170_s6 = scalar_lea.sflag [#allocation3], %s862_s7  ;;  %s886_s4 = int_to_ptr.vmem [resolvable:$true] %s181_s4 }
  0x2f   : > { %s884_s28 = scalar_select %p42_p8, %s731_s14, %s44_s20  }
  0x30   : > { %p595_p13 = pneg %p846_p2 }
  0x33   : > { %s879_s26 = scalar_lea.hbm %s1050_s0, %s485_s18  ;;  %s598_s18 = scalar_lea.hbm %s1050_s0, 256 }
  0x34   : > { %s593_s8 = scalar_lea.hbm %s879_s26, 128  ;;  %p599_p10 = scmp.lt.u32.totalorder %s879_s26, %s1050_s0 }
  0x35   : > { %p594_p9 = scmp.ne.s32.totalorder %s879_s26, %s593_s8  ;;  %p600_p5 = scmp.lt.u32.totalorder %s598_s18, %s593_s8 }
  0x36   : > { %p602_p0 = scmp.lt.u32.totalorder %s593_s8, %s879_s26 }
  0x37   : > { %p596_p4 = pnand %p595_p13, %p594_p9  ;;  %p601_p11 = por %p600_p5, %p599_p10 }
  0x39   : > { %p597_p6 = pneg %p596_p4  ;;  %p603_p1 = por %p602_p0, %p601_p11 }
  0x3b   : > { %p604_p8 = pnand %p603_p1, %p597_p6 }
  0x3d   : > { %607 = shalt.err (!%p604_p8)
}
  0x3e   : > { %s608_s20 = scalar_lea.vmem %s886_s4, 128  ;;  %s746_s22 = smov [#allocation2]  }
  0x3f   : > { %p609_p9 = scmp.ne.s32.totalorder %s886_s4, %s608_s20  ;;  %s613_s27 = sshll.u32 %s746_s22, 4  ;;  %s614_s27 = int_to_ptr.vmem [resolvable:$false] %s613_s27 }
  0x40   : > { %s615_s9 = scalar_lea.vmem %s614_s27, 256  ;;  %p616_p7 = scmp.lt.s32.totalorder %s886_s4, %s614_s27 }
  0x41   : > { %p611_p4 = pnand %p609_p9, %p595_p13  ;;  %p617_p10 = scmp.lt.s32.totalorder %s615_s9, %s608_s20 }
  0x43   : > { %p612_p3 = pneg %p611_p4  ;;  %p618_p5 = por %p617_p10, %p616_p7 }
  0x45   : > { %p619_p11 = pnand %p618_p5, %p612_p3 }
  0x47   : > { %622 = shalt.err (!%p619_p11)
}
  0x48   : > { %s747_s8 = smov 32   ;;  %s748_s11 = smov 2  }
  0x49   : > { %503 = dma.hbm_to_vmem [thread:$0]  (!%p846_p2), %s879_s26, 128, %s886_s4, %s170_s6, %s747_s8, %s747_s8, %s748_s11  }
  0x4a   : > { %s468_s18 = sshll.u32 %s862_s7, 1  ;;  %s469_s10 = sshll.u32 %s739_s16, 5 }
  0x4b   : > { %s921_s22 = scalar_lea.hbm %s1030_s1, %s469_s10  ;;  %s195_s27 = scalar_lea.vmem [#allocation6], %s468_s18 }
  0x4c   : > { %s203_s9 = sshll.u32 %s195_s27, 4  ;;  %s192_s0 = scalar_lea.sflag [#allocation7], %s862_s7  ;;  %s204_s9 = int_to_ptr.vmem [resolvable:$true] %s203_s9 }
  0x4d   : > { %s623_s2 = scalar_lea.hbm %s921_s22, 32  ;;  %s628_s6 = scalar_lea.hbm %s1030_s1, 64 }
  0x4e   : > { %p624_p3 = scmp.ne.s32.totalorder %s921_s22, %s623_s2  ;;  %p629_p0 = scmp.lt.u32.totalorder %s921_s22, %s1030_s1 }
  0x4f   : > { %p630_p1 = scmp.lt.u32.totalorder %s628_s6, %s623_s2  ;;  %p632_p9 = scmp.lt.u32.totalorder %s623_s2, %s921_s22 }
  0x50   : > { %p626_p7 = pnand %p624_p3, %p595_p13 }
  0x51   : > { %p631_p8 = por %p630_p1, %p629_p0 }
  0x52   : > { %p627_p6 = pneg %p626_p7 }
  0x53   : > { %p633_p4 = por %p632_p9, %p631_p8 }
  0x55   : > { %p634_p10 = pnand %p633_p4, %p627_p6 }
  0x57   : > { %637 = shalt.err (!%p634_p10)
}
  0x58   : > { %s638_s7 = scalar_lea.vmem %s204_s9, 32  ;;  %s749_s18 = smov [#allocation6]  }
  0x59   : > { %p639_p5 = scmp.ne.s32.totalorder %s204_s9, %s638_s7  ;;  %s643_s10 = sshll.u32 %s749_s18, 4  ;;  %s644_s10 = int_to_ptr.vmem [resolvable:$false] %s643_s10 }
  0x5a   : > { %s645_s19 = scalar_lea.vmem %s644_s10, 64  ;;  %p646_p7 = scmp.lt.s32.totalorder %s204_s9, %s644_s10 }
  0x5b   : > { %p641_p11 = pnand %p639_p5, %p595_p13  ;;  %p647_p12 = scmp.lt.s32.totalorder %s645_s19, %s638_s7 }
  0x5d   : > { %p642_p3 = pneg %p641_p11  ;;  %p648_p0 = por %p647_p12, %p646_p7 }
  0x5f   : > { %p649_p1 = pnand %p648_p0, %p642_p3 }
  0x61   : > { %652 = shalt.err (!%p649_p1)
}
  0x62   : > { %506 = dma.hbm_to_vmem [thread:$0]  (!%p846_p2), %s921_s22, 32, %s204_s9, %s192_s0  }
  0x63   : > { %p1051_p6 = scmp.ne.s32.totalorder %s1046_s29, 0 }
  0x64   : > { %s946_s2 = sand.u32 (!%p1051_p6), 1, %s727_s13   ;;  %p1052_p13 = scmp.ne.s32.totalorder (!%p1051_p6), %s1042_s23, 0 }
  0x65   : > { %212 = sbr.rel (%p1051_p6) target bundleno = 200 (0xc8), region = 32  ;;  %s471_s20 = sshll.u32 (!%p1051_p6), %s946_s2, 3 }
  0x66   : > { %s215_s27 = scalar_lea.sflag (!%p1051_p6), [#allocation3], %s946_s2  ;;  %s218_s26 = scalar_lea.vmem (!%p1051_p6), [#allocation2], %s471_s20 }
  0x6c   : > { %706 = dma.done.wait (%p1052_p13), %s215_s27, 128  }
  0x6d   : > { %708 = vsyncadd (%p1052_p13), %s215_s27, 4294967168  ;;  %s472_s0 = sshll.u32 %s946_s2, 1  ;;  %s224_s29 = scalar_lea.sflag [#allocation7], %s946_s2 }
  0x6e   : > { %s227_s30 = scalar_lea.vmem [#allocation6], %s472_s0 }
  0x6f   : > { %710 = dma.done.wait (%p1052_p13), %s224_s29, 32  }
  0x70   : > { %712 = vsyncadd (%p1052_p13), %s224_s29, 4294967264  ;;  %p1053_p12 = scmp.ne.s32.totalorder %s1040_s21, 0 }
  0x72   : > { %714 = dma.done.wait (%p1053_p12), [#allocation5], 16  }
  0x73   : > { %716 = vsyncadd (%p1053_p12), [#allocation5], 4294967280 }
  0x74   : > { %236 = sfence }
  0x75   : > { %v261_v0 = vld [vmem:[%s218_s26] sm:$0x3]  ;;  %v475_v1 = vld [vmem:[%s218_s26 + $0x2] sm:$0x3]  ;;  %v476_v2 = vld [vmem:[%s218_s26 + $0x4] sm:$0x3] }
  0x76   : > { %v264_v3 = vmax.f32 %v261_v0, %v475_v1  ;;  %v477_v4 = vld [vmem:[%s218_s26 + $0x6] sm:$0x3]  ;;  %v260_v20 = vld [vmem:[%s227_s30] sm:$0x3]  ;;  %s278_s21 = sld [smem:[#allocation8]]  ;;  %s478_s23 = sld [smem:[#allocation8 + $0x1]] }
  0x77   : > { %vm276_vm0 = vcmp.eq.s32.totalorder %v260_v20, 0  ;;  %vm286_vm1 = vcmp.eq.s32.totalorder %v260_v20, 1  ;;  %vm296_vm2 = vcmp.eq.s32.totalorder %v260_v20, 2  ;;  %vm306_vm3 = vcmp.eq.s32.totalorder %v260_v20, 3  ;;  %s479_s22 = sld [smem:[#allocation8 + $0x2]]  ;;  %s480_s9 = sld [smem:[#allocation8 + $0x3]] }
  0x78   : > { %v267_v5 = vmax.f32 %v264_v3, %v476_v2  ;;  %s259_s4 = scalar_lea.vmem [#allocation9], %s472_s0  ;;  %s482_s8 = sshll.u32 %s735_s15, 5 }
  0x79   : > { %s343_s6 = sshll.u32 %s259_s4, 4  ;;  %s982_s18 = scalar_lea.hbm %s1032_s3, %s482_s8  ;;  %s977_s6 = int_to_ptr.vmem [resolvable:$true] %s343_s6 }
  0x7a   : > { %v270_v6 = vmax.f32 %v267_v5, %v477_v4  ;;  %s329_s10 = scalar_lea.sflag [#allocation4], %s946_s2  ;;  %s653_s19 = scalar_lea.vmem %s977_s6, 32 }
  0x7b   : > { %p654_p2 = scmp.ne.s32.totalorder %s977_s6, %s653_s19  ;;  %p1054_p8 = scmp.ne.s32.totalorder %s1043_s24, 0 }
  0x7c   : > { %v271_v7 = vsub.f32 %v261_v0, %v270_v6  ;;  %v281_v8 = vsub.f32 %v475_v1, %v270_v6  ;;  %v291_v9 = vsub.f32 %v476_v2, %v270_v6  ;;  %v301_v10 = vsub.f32 %v477_v4, %v270_v6  ;;  %s750_s15 = smov [#allocation9]  }
  0x7d   : > { %v279_v29 = vstv %s278_s21  ;;  %v289_v34 = vstv %s478_s23  ;;  %v299_v37 = vstv %s479_s22  ;;  %v309_v40 = vstv %s480_s9  ;;  %p655_p9 = pnand %p654_p2, %p1054_p8  ;;  %s657_s20 = sshll.u32 %s750_s15, 4  ;;  %s658_s20 = int_to_ptr.vmem [resolvable:$false] %s657_s20 }
  0x7e   : > { %v272_v11 = vmul.f32 1.442695, %v271_v7  ;;  %v282_v12 = vmul.f32 1.442695, %v281_v8  ;;  %v292_v13 = vmul.f32 1.442695, %v291_v9  ;;  %v285_v31 = vadd.f32 %v281_v8, %v271_v7  ;;  %p660_p10 = scmp.lt.s32.totalorder %s977_s6, %s658_s20 }
  0x7f   : > { %v302_v14 = vmul.f32 1.442695, %v301_v10  ;;  %v277_v23 = vsel %vm276_vm0, %v271_v7, 0.0  ;;  %v280_v33 = vsel %vm276_vm0, %v279_v29, 0.0  ;;  %p656_p4 = pneg %p655_p9  ;;  %s659_s27 = scalar_lea.vmem %s658_s20, 64 }
  0x80   : > { %566 = vpow2.f32 %v272_v11  ;;  %v287_v24 = vsel %vm286_vm1, %v281_v8, %v277_v23  ;;  %v295_v35 = vadd.f32 %v291_v9, %v285_v31  ;;  %v290_v36 = vsel %vm286_vm1, %v289_v34, %v280_v33  ;;  %p661_p5 = scmp.lt.s32.totalorder %s659_s27, %s653_s19 }
  0x81   : > { %568 = vpow2.f32 %v282_v12  ;;  %v297_v25 = vsel %vm296_vm2, %v291_v9, %v287_v24  ;;  %v300_v38 = vsel %vm296_vm2, %v299_v37, %v290_v36 }
  0x82   : > { %570 = vpow2.f32 %v292_v13  ;;  %v307_v27 = vsel %vm306_vm3, %v301_v10, %v297_v25  ;;  %v305_v39 = vadd.f32 %v301_v10, %v295_v35  ;;  %v310_v42 = vsel %vm306_vm3, %v309_v40, %v300_v38  ;;  %p662_p11 = por %p661_p5, %p660_p10 }
  0x83   : > { %572 = vpow2.f32 %v302_v14  ;;  %v318_v46 = vsub.f32 0.0, %v310_v42 }
  0x84   : > { %p663_p3 = pnand %p662_p11, %p656_p4 }
  0x8a   : > { %v567_v15 = vpop.eup %566 }
  0x8b   : > { %v569_v16 = vpop.eup %568 }
  0x8c   : > { %v571_v17 = vpop.eup %570  ;;  %v284_v18 = vadd.f32 %v569_v16, %v567_v15 }
  0x8d   : > { %v573_v19 = vpop.eup %572 }
  0x8e   : > { %v294_v21 = vadd.f32 %v571_v17, %v284_v18 }
  0x90   : > { %v304_v22 = vadd.f32 %v573_v19, %v294_v21 }
  0x92   : > { %574 = vlog2.f32 %v304_v22 }
  0x9c   : > { %v575_v26 = vpop.eup %574 }
  0x9d   : > { %v312_v28 = vmul.f32 0.6931472, %v575_v26 }
  0x9f   : > { %v313_v30 = vsub.f32 %v307_v27, %v312_v28  ;;  %v321_v41 = vmul.f32 4.0, %v312_v28 }
  0xa1   : > { %v314_v32 = vmul.f32 1.442695, %v313_v30  ;;  %v322_v43 = vsub.f32 %v321_v41, %v305_v39 }
  0xa3   : > { %576 = vpow2.f32 %v314_v32  ;;  %v323_v48 = vmul.f32 0.25, %v322_v43 }
  0xa5   : > { %v325_v51 = vmul.f32 0.01, %v323_v48 }
  0xad   : > { %v577_v44 = vpop.eup %576 }
  0xae   : > { %v316_v45 = vsub.f32 1.0, %v577_v44 }
  0xb0   : > { %v317_v47 = vmul.f32 %v316_v45, %v316_v45 }
  0xb2   : > { %v319_v49 = vmul.f32 %v318_v46, %v317_v47 }
  0xb4   : > { %v320_v50 = vmul.f32 %v319_v49, %v313_v30 }
  0xb6   : > { %v324_v52 = vmul.f32 0.99, %v320_v50 }
  0xb8   : > { %v326_v53 = vadd.f32 %v325_v51, %v324_v52 }
  0xba   : > { %327 = vst [vmem:[%s259_s4] sm:$0x3] %v326_v53 }
  0xbb   : > { %666 = shalt.err (!%p663_p3)
}
  0xbc   : > { %s667_s2 = scalar_lea.hbm %s982_s18, 32  ;;  %s671_s29 = scalar_lea.hbm %s1032_s3, 64 }
  0xbd   : > { %p668_p7 = scmp.ne.s32.totalorder %s982_s18, %s667_s2  ;;  %p672_p6 = scmp.lt.u32.totalorder %s982_s18, %s1032_s3 }
  0xbe   : > { %p673_p13 = scmp.lt.u32.totalorder %s671_s29, %s667_s2  ;;  %p675_p2 = scmp.lt.u32.totalorder %s667_s2, %s982_s18 }
  0xbf   : > { %p669_p0 = pnand %p668_p7, %p1054_p8 }
  0xc0   : > { %p674_p12 = por %p673_p13, %p672_p6 }
  0xc1   : > { %p670_p1 = pneg %p669_p0 }
  0xc2   : > { %p676_p9 = por %p675_p2, %p674_p12 }
  0xc4   : > { %p677_p4 = pnand %p676_p9, %p670_p1 }
  0xc6   : > { %680 = shalt.err (!%p677_p4)
}
  0xc7   : > { %494 = dma.vmem_to_hbm [thread:$0]  (%p1054_p8), %s977_s6, 32, %s982_s18, %s329_s10  }
  0xc8 PF: > { %s355_s23 = sand.u32 1, %s723_s12   ;;  %p1055_p10 = scmp.ne.s32.totalorder %s1044_s25, 0 }
  0xc9   : > { %p1056_p5 = scmp.ge.s32.totalorder %s743_s17, 2  ;;  %s356_s22 = scalar_lea.sflag [#allocation4], %s355_s23 }
  0xcb   : > { %p508_p11 = pnand %p1056_p5, %p1055_p10 }
  0xcd   : > { %718 = dma.done.wait (!%p508_p11), %s356_s22, 32  }
  0xce   : > { %720 = vsyncadd (!%p508_p11), %s356_s22, 4294967264  ;;  %s23_s17 = sadd.s32 1, %s743_s17   ;;  %s1057_s12 = smov %s727_s13 }
  0xcf   : > { %p20_p3 = scmp.ge.s32.totalorder %s23_s17, 4   ;;  %s1058_s13 = smov %s731_s14 }
  0xd0   : > { %s1059_s14 = smov %s884_s28  ;;  %s1060_s15 = smov %s739_s16 }
  0xd1   : > { %s1061_s16 = smov %s1063_s5  ;;  %22 = sbr.rel (!%p20_p3) target bundleno = 12 (0xc), region = 98 }
  0xd8   :  { %361 = vsyncpa [#allocation3], 1 }
  0xd9   :  { %363 = vsyncpa [#allocation3 + $0x1], 1 }
  0xda   :  { %364 = vsyncpa [#allocation7], 1 }
  0xdb   :  { %366 = vsyncpa [#allocation7 + $0x1], 1 }
  0xdc   :  { %367 = vsyncpa [#allocation4], 1 }
  0xdd   :  { %369 = vsyncpa [#allocation4 + $0x1], 1 }
  0xde   :  { %370 = vsyncpa [#allocation5], 1 }
  0xdf   :  { %372 = vsyncpa [#allocation5 + $0x1], 1 }

</bundles_post_ra>
